<compile_context>
chip_gen: v7x
topology: tpu7x:2x2x1
jax: 0.10.0
libtpu: 0.0.40
codegen_flags: <defaults>
</compile_context>

<pallas_src>
import functools

import jax
import jax.numpy as jnp
from jax.experimental import pallas as pl
from jax.experimental.pallas import tpu as pltpu

_LANE = 128        # lane width of a vreg
_SUBLANE = 8       # sublane count of a vreg
_ROW_TILE = 256    # row tile when streaming a large batch through a grid
_GRID_THRESHOLD = 512  # above this many padded rows, switch to the row grid


def _round_up(n, m):
    return ((n + m - 1) // m) * m


# ----------------------------------------------------------------------------
# Kernel (shared by single-head and fused dual-head paths)
# ----------------------------------------------------------------------------
def _mlp_kernel(x_ref, w1_ref, w2_ref, o_ref):
    """out = relu(x_aug @ W1_packed) @ W2_packed.

    b1 is folded into W1_packed (bias row driven by the ones column of x_aug);
    b2 is folded into W2_packed (bias row driven by the hidden ones-unit).
    Two MXU pushes + one ReLU, single lane-dense store.
    """
    h = jnp.maximum(
        jnp.dot(x_ref[...], w1_ref[...], preferred_element_type=jnp.float32),
        0.0)
    o_ref[...] = jnp.dot(h.astype(w2_ref.dtype), w2_ref[...],
                         preferred_element_type=jnp.float32).astype(o_ref.dtype)


_VMEM = pl.BlockSpec(memory_space=pltpu.MemorySpace.VMEM)


def _run_mlp(xp, w1, w2):
    """Launch the fused MLP kernel on padded operands; returns padded output."""
    bp, kp = xp.shape
    hidden = w1.shape[1]
    out_cols = w2.shape[1]
    out_shape = jax.ShapeDtypeStruct((bp, out_cols), xp.dtype)

    if bp <= _GRID_THRESHOLD:
        # Launch-overhead regime: whole arrays resident in VMEM, single grid
        # point, 3 input DMAs + 1 output DMA.
        return pl.pallas_call(
            _mlp_kernel,
            out_shape=out_shape,
            in_specs=[_VMEM, _VMEM, _VMEM],
            out_specs=_VMEM,
        )(xp, w1, w2)

    # Streaming regime: row grid; weights pinned to block (0, 0) so they stay
    # VMEM-resident across grid steps; row grid shards across TCs on v7x.
    grid = (bp // _ROW_TILE,)
    return pl.pallas_call(
        _mlp_kernel,
        out_shape=out_shape,
        grid=grid,
        in_specs=[
            pl.BlockSpec((_ROW_TILE, kp), lambda i: (i, 0)),
            pl.BlockSpec((kp, hidden), lambda i: (0, 0)),
            pl.BlockSpec((hidden, out_cols), lambda i: (0, 0)),
        ],
        out_specs=pl.BlockSpec((_ROW_TILE, out_cols), lambda i: (i, 0)),
        compiler_params=pltpu.CompilerParams(
            dimension_semantics=("parallel",)),
    )(xp, w1, w2)


def _pack_x(x, input_dim, kp):
    """Pad batch rows to the kernel row granularity and append the ones column
    (plus zero columns) so x_aug has kp (multiple-of-8) feature columns."""
    batch = x.shape[0]
    bp = _round_up(max(batch, 1), _SUBLANE)
    if bp > _GRID_THRESHOLD:
        bp = _round_up(batch, _ROW_TILE)
    xp = jnp.pad(x, ((0, bp - batch), (0, kp - input_dim)))
    xp = xp.at[:, input_dim].set(1.0)  # ones column drives the folded b1
    return xp


# ----------------------------------------------------------------------------
# Jitted wrappers (pack x -> pallas_call -> slice real columns)
# ----------------------------------------------------------------------------
@functools.partial(jax.jit, static_argnames=("input_dim", "out_dim"))
def _decode_one(x, w1, w2, *, input_dim, out_dim):
    xp = _pack_x(x, input_dim, w1.shape[0])
    out = _run_mlp(xp, w1, w2)
    return out[:x.shape[0], :out_dim]


@functools.partial(jax.jit,
                   static_argnames=("input_dim", "appear_dim", "motion_dim"))
def _decode_both(x, w1, w2, *, input_dim, appear_dim, motion_dim):
    xp = _pack_x(x, input_dim, w1.shape[0])
    out = _run_mlp(xp, w1, w2)
    batch = x.shape[0]
    return (out[:batch, :appear_dim],
            out[:batch, appear_dim:appear_dim + motion_dim])


# ----------------------------------------------------------------------------
# Model
# ----------------------------------------------------------------------------
class DecoderModelPallas:
    """JAX/Pallas port of DecoderModel (appear / motion 2-layer MLP decoders)."""

    def __init__(self, input_dim, appear_output_dim, motion_output_dim,
                 background_output_dim, hidden_dim, key,
                 param_dtype=jnp.float32, weight_init=False):
        # background_output_dim / weight_init are accepted (torch signature)
        # but unused by the forward pass.
        del background_output_dim, weight_init

        self.input_dim = int(input_dim)
        self.appear_output_dim = int(appear_output_dim)
        self.motion_output_dim = int(motion_output_dim)
        hid_a, hid_m = int(hidden_dim[0]), int(hidden_dim[1])

        k = jax.random.split(key, 8)
        scale = 0.02

        def init(kk, shape):
            return (scale * jax.random.normal(kk, shape)).astype(jnp.float32)

        # Real-shape parameters (kept for the pure-JAX reference / export).
        self.params = dict(
            appear_w1=init(k[0], (self.input_dim, hid_a)),
            appear_b1=init(k[1], (1, hid_a)),
            appear_w2=init(k[2], (hid_a, self.appear_output_dim)),
            appear_b2=init(k[3], (1, self.appear_output_dim)),
            motion_w1=init(k[4], (self.input_dim, hid_m)),
            motion_b1=init(k[5], (1, hid_m)),
            motion_w2=init(k[6], (hid_m, self.motion_output_dim)),
            motion_b2=init(k[7], (1, self.motion_output_dim)),
        )
        p = self.params

        # x_aug column count (input_dim real cols + 1 ones col, rounded to 8).
        self._kp = _round_up(self.input_dim + 1, _SUBLANE)

        def pack_head(w1, b1, w2, b2):
            D, hid = w1.shape
            out = w2.shape[1]
            H = _round_up(hid + 1, _LANE)   # +1 for the hidden ones-unit
            O = _round_up(out, _LANE)
            W1 = jnp.zeros((self._kp, H), jnp.float32)
            W1 = W1.at[:D, :hid].set(w1)
            W1 = W1.at[D, :hid].set(b1[0])   # b1 row, driven by x ones column
            W1 = W1.at[D, hid].set(1.0)      # hidden ones-unit (relu(1) = 1)
            W2 = jnp.zeros((H, O), jnp.float32)
            W2 = W2.at[:hid, :out].set(w2)
            W2 = W2.at[hid, :out].set(b2[0])  # b2 row, driven by ones-unit
            return W1.astype(param_dtype), W2.astype(param_dtype)

        # Per-head packed params (used by __call__ / `sign` selection).
        self.appear_w1p, self.appear_w2p = pack_head(
            p["appear_w1"], p["appear_b1"], p["appear_w2"], p["appear_b2"])
        self.motion_w1p, self.motion_w2p = pack_head(
            p["motion_w1"], p["motion_b1"], p["motion_w2"], p["motion_b2"])

        # Fused both-heads packing: hidden units packed contiguously
        # (hid_a + hid_m + ones-unit), block-diagonal W2, outputs packed
        # contiguously into one lane-padded slab.
        D = self.input_dim
        hid_t = hid_a + hid_m
        out_a, out_m = self.appear_output_dim, self.motion_output_dim
        out_t = out_a + out_m
        Hb = _round_up(hid_t + 1, _LANE)
        Ob = _round_up(out_t, _LANE)
        W1 = jnp.zeros((self._kp, Hb), jnp.float32)
        W1 = W1.at[:D, :hid_a].set(p["appear_w1"])
        W1 = W1.at[:D, hid_a:hid_t].set(p["motion_w1"])
        W1 = W1.at[D, :hid_a].set(p["appear_b1"][0])
        W1 = W1.at[D, hid_a:hid_t].set(p["motion_b1"][0])
        W1 = W1.at[D, hid_t].set(1.0)
        W2 = jnp.zeros((Hb, Ob), jnp.float32)
        W2 = W2.at[:hid_a, :out_a].set(p["appear_w2"])
        W2 = W2.at[hid_a:hid_t, out_a:out_t].set(p["motion_w2"])
        W2 = W2.at[hid_t, :out_a].set(p["appear_b2"][0])
        W2 = W2.at[hid_t, out_a:out_t].set(p["motion_b2"][0])
        self.both_w1p = W1.astype(param_dtype)
        self.both_w2p = W2.astype(param_dtype)

    def __call__(self, inputs, sign):
        # `sign` is a static Python int, matching the torch control flow.
        if sign == 0:
            return _decode_one(inputs, self.appear_w1p, self.appear_w2p,
                               input_dim=self.input_dim,
                               out_dim=self.appear_output_dim)
        elif sign == 1:
            return _decode_one(inputs, self.motion_w1p, self.motion_w2p,
                               input_dim=self.input_dim,
                               out_dim=self.motion_output_dim)
        raise ValueError("sign must be 0 or 1")

    def forward_both(self, inputs):
        """Fused path: both decoders in one pallas_call / one matmul chain."""
        return _decode_both(inputs, self.both_w1p, self.both_w2p,
                            input_dim=self.input_dim,
                            appear_dim=self.appear_output_dim,
                            motion_dim=self.motion_output_dim)


def _reference_mlp(x, w1, b1, w2, b2):
    h = jnp.maximum(x @ w1 + b1, 0.0)
    return h @ w2 + b2


if __name__ == "__main__":
    key = jax.random.PRNGKey(0)
    k_param, k_x, k_big = jax.random.split(key, 3)

    batch = 8
    input_dim = 32
    hidden_dim = [64, 48]
    appear_output_dim = 16
    motion_output_dim = 24
    background_output_dim = 8  # accepted by the module, unused in forward

    model = DecoderModelPallas(input_dim, appear_output_dim, motion_output_dim,
                               background_output_dim, hidden_dim, k_param)

    x = jax.random.normal(k_x, (batch, input_dim), dtype=jnp.float32)

    out_appear = jax.block_until_ready(model(x, 0))
    out_motion = jax.block_until_ready(model(x, 1))
    both_a, both_m = model.forward_both(x)
    both_a = jax.block_until_ready(both_a)
    both_m = jax.block_until_ready(both_m)

    assert out_appear.shape == (batch, appear_output_dim)
    assert out_motion.shape == (batch, motion_output_dim)
    assert both_a.shape == (batch, appear_output_dim)
    assert both_m.shape == (batch, motion_output_dim)

    p = model.params
    ref_appear = _reference_mlp(x, p["appear_w1"], p["appear_b1"],
                                p["appear_w2"], p["appear_b2"])
    ref_motion = _reference_mlp(x, p["motion_w1"], p["motion_b1"],
                                p["motion_w2"], p["motion_b2"])
    assert jnp.allclose(out_appear, ref_appear, atol=1e-5, rtol=1e-5)
    assert jnp.allclose(out_motion, ref_motion, atol=1e-5, rtol=1e-5)
    assert jnp.allclose(both_a, ref_appear, atol=1e-5, rtol=1e-5)
    assert jnp.allclose(both_m, ref_motion, atol=1e-5, rtol=1e-5)

    # Streaming-regime check: large batch exercises the row-grid path
    # (tile 256, weights VMEM-resident, "parallel" row dimension).
    big_batch = 1024
    xb = jax.random.normal(k_big, (big_batch, input_dim), dtype=jnp.float32)
    out_big = jax.block_until_ready(model(xb, 0))
    ref_big = _reference_mlp(xb, p["appear_w1"], p["appear_b1"],
                             p["appear_w2"], p["appear_b2"])
    assert out_big.shape == (big_batch, appear_output_dim)
    assert jnp.allclose(out_big, ref_big, atol=1e-5, rtol=1e-5)

    print("KERNEL_OK")
</pallas_src>

<mosaic_0001>
module attributes {stable_mosaic.version = 11 : i64} {
  func.func @_mlp_kernel(%arg0: memref<8x40xf32, #tpu.memory_space<vmem>>, %arg1: memref<40x128xf32, #tpu.memory_space<vmem>>, %arg2: memref<128x128xf32, #tpu.memory_space<vmem>>, %arg3: memref<8x128xf32, #tpu.memory_space<vmem>>) attributes {dimension_semantics = [], scalar_prefetch = 0 : i64, scratch_operands = 0 : i64, tpu.core_type = #tpu.core_type<tc>} {
    %c0 = arith.constant 0 : index
    %c0_0 = arith.constant 0 : index
    %0 = vector.load %arg0[%c0, %c0_0] : memref<8x40xf32, #tpu.memory_space<vmem>>, vector<8x40xf32>
    %c0_1 = arith.constant 0 : index
    %c0_2 = arith.constant 0 : index
    %1 = vector.load %arg1[%c0_1, %c0_2] : memref<40x128xf32, #tpu.memory_space<vmem>>, vector<40x128xf32>
    %cst = arith.constant dense<0.000000e+00> : vector<8x128xf32>
    %2 = tpu.matmul %0, %1, %cst {dimension_numbers = #tpu.dot_dimension_numbers<[1], [0], [0], [1], [0, 0, 1, 1], [], []>} : vector<8x40xf32>, vector<40x128xf32>, vector<8x128xf32> -> vector<8x128xf32>
    %cst_3 = arith.constant 0.000000e+00 : f32
    %3 = vector.broadcast %cst_3 : f32 to vector<8x128xf32>
    %4 = arith.maximumf %2, %3 : vector<8x128xf32>
    %c0_4 = arith.constant 0 : index
    %c0_5 = arith.constant 0 : index
    %5 = vector.load %arg2[%c0_4, %c0_5] : memref<128x128xf32, #tpu.memory_space<vmem>>, vector<128x128xf32>
    %cst_6 = arith.constant dense<0.000000e+00> : vector<8x128xf32>
    %6 = tpu.matmul %4, %5, %cst_6 {dimension_numbers = #tpu.dot_dimension_numbers<[1], [0], [0], [1], [0, 0, 1, 1], [], []>} : vector<8x128xf32>, vector<128x128xf32>, vector<8x128xf32> -> vector<8x128xf32>
    %c0_7 = arith.constant 0 : index
    %c0_8 = arith.constant 0 : index
    %7 = vector.load %arg3[%c0_7, %c0_8] : memref<8x128xf32, #tpu.memory_space<vmem>>, vector<8x128xf32>
    tpu.vector_store %arg3[%c0_7, %c0_8], %6 {strides = array<i32>} : memref<8x128xf32, #tpu.memory_space<vmem>>, vector<8x128xf32>,
    return
  }
}

</mosaic_0001>

<bundles_post_ra>
// kernel: _decode_one.1
= control target key start
LH: loop header
LB: loop body
LE: loop exit
PB: predicated region body
PF: predicated region fallthrough
CT: control target
= control target key end

     0   :  { %8 = vsyncpa [#allocation3], 0  ;;  %s438_s0 = inlined_call_operand.vmem [shape: f32[8,40], index: 0, kind: input, shape index: {}]   ;;  %s439_s1 = inlined_call_operand.vmem [shape: f32[40,128], index: 1, kind: input, shape index: {}]   ;;  %s440_s2 = inlined_call_operand.hbm [shape: f32[128,128], index: 2, kind: input, shape index: {}]   ;;  %s441_s3 = inlined_call_operand.hbm [shape: f32[8,128], index: 3, kind: output, shape index: {}]  }
   0x1   :  { %9 = vsyncpa [#allocation4], 0  ;;  %s369_s12 = smov [#allocation2]   ;;  %s321_s16 = scalar_lea.hbm %s440_s2, 2048 }
   0x2   :  { %s19_s13 = sshll.u32 %s369_s12, 4  ;;  %p322_p0 = scmp.ne.s32.totalorder %s440_s2, %s321_s16  ;;  %s20_s13 = int_to_ptr.vmem [resolvable:$true] %s19_s13 }
   0x3   :  { %p325_p1 = scmp.lt.u32.totalorder %s321_s16, %s440_s2 }
   0x5   :  { %p327_p2 = pnand %p325_p1, %p322_p0 }
   0x7   :  { %330 = shalt.err (!%p327_p2)
}
   0x8   :  { %s331_s21 = scalar_lea.vmem %s20_s13, 2048  ;;  %p336_p4 = scmp.lt.s32.totalorder %s20_s13, %s20_s13 }
   0x9   :  { %p332_p3 = scmp.ne.s32.totalorder %s20_s13, %s331_s21  ;;  %p337_p5 = scmp.lt.s32.totalorder %s331_s21, %s331_s21 }
   0xb   :  { %p338_p6 = por %p337_p5, %p336_p4 }
   0xd   :  { %p339_p7 = pnand %p338_p6, %p332_p3 }
   0xf   :  { %342 = shalt.err (!%p339_p7)
}
  0x10   :  { %s370_s22 = smov 128   ;;  %s371_s23 = smov 8  }
  0x11   :  { %25 = dma.hbm_to_vmem [thread:$0]  %s440_s2, 2048, %s20_s13, [#allocation3], %s370_s22, %s370_s22, %s371_s23  }
  0x12   :  { %365 = dma.done.wait [#allocation3], 2048  }
  0x13   :  { %366 = vsyncadd [#allocation3], 4294965248  ;;  %v372_v0 = vmov 0.0|0.0   ;;  %vm373_vm0 = vmmov 0   ;;  %v374_v1 = vmov 0.0   ;;  %v30_v2 = vld [vmem:[%s439_s1] sm:$0xff] }
  0x14   :  { %284 = vmatprep.subr.bf16.mxu0 %v372_v0  ;;  %246 = vmatprep.mubr.msk.f32.mxu0 %vm373_vm0, %v374_v1  ;;  %v31_v3 = vld [vmem:[%s439_s1 + $0x8] sm:$0xff]  ;;  %v32_v4 = vld [vmem:[%s439_s1 + $0x10] sm:$0xff]  ;;  %v33_v6 = vld [vmem:[%s439_s1 + $0x18] sm:$0xff]  ;;  %vm35_vm1 = vcmask 326656  }
  0x15   :  { %290 = vmatprep.subr.bf16.mxu1 %v372_v0  ;;  %281 = vmatprep.mubr.msk.f32.mxu1 %vm373_vm0, %v374_v1  ;;  %v285_v5 = vpack.c.bf16 %v31_v3, %v30_v2  ;;  %v110_v7 = vld [vmem:[#allocation2] sm:$0xff]  ;;  %v111_v8 = vld [vmem:[#allocation2 + $0x8] sm:$0xff]  ;;  %v112_v9 = vld [vmem:[#allocation2 + $0x10] sm:$0xff]  ;;  %v288_v10 = vpack.c.bf16 %v33_v6, %v32_v4 }
  0x16   :  { %v291_v11 = vpack.c.bf16 %v111_v8, %v110_v7  ;;  %v113_v12 = vld [vmem:[#allocation2 + $0x18] sm:$0xff]  ;;  %v114_v14 = vld [vmem:[#allocation2 + $0x20] sm:$0xff]  ;;  %v115_v15 = vld [vmem:[#allocation2 + $0x28] sm:$0xff] }
  0x17   :  { %286 = vmatpush3.bf16.msra.mxu0 %v285_v5  ;;  %v294_v13 = vpack.c.bf16 %v113_v12, %v112_v9  ;;  %v34_v16 = vld [vmem:[%s439_s1 + $0x20] sm:$0xff]  ;;  %v297_v18 = vpack.c.bf16 %v115_v15, %v114_v14  ;;  %v116_v19 = vld [vmem:[#allocation2 + $0x30] sm:$0xff]  ;;  %v117_v20 = vld [vmem:[#allocation2 + $0x38] sm:$0xff] }
  0x18   :  { %287 = vmatprep.subr.bf16.mxu0 %v372_v0  ;;  %292 = vmatpush3.bf16.msra.mxu1 %v291_v11  ;;  %v29_v17 = vld [vmem:[%s438_s0] sm:$0xff]  ;;  %v300_v21 = vpack.c.bf16 %v117_v20, %v116_v19  ;;  %v119_v23 = vld [vmem:[#allocation2 + $0x48] sm:$0xff]  ;;  %v120_v25 = vld [vmem:[#allocation2 + $0x50] sm:$0xff]  ;;  %s375_s0 = smov [#allocation5]  }
  0x19   :  { %293 = vmatprep.subr.bf16.mxu1 %v372_v0  ;;  %v118_v22 = vld [vmem:[#allocation2 + $0x40] sm:$0xff]  ;;  %v121_v26 = vld [vmem:[#allocation2 + $0x58] sm:$0xff]  ;;  %v123_v29 = vld [vmem:[#allocation2 + $0x68] sm:$0xff]  ;;  %s203_s1 = sshll.u32 %s375_s0, 4  ;;  %s204_s1 = int_to_ptr.vmem [resolvable:$true] %s203_s1 }
  0x1a   :  { %v303_v24 = vpack.c.bf16 %v119_v23, %v118_v22  ;;  %v306_v27 = vpack.c.bf16 %v121_v26, %v120_v25  ;;  %v122_v28 = vld [vmem:[#allocation2 + $0x60] sm:$0xff]  ;;  %v124_v31 = vld [vmem:[#allocation2 + $0x70] sm:$0xff]  ;;  %v125_v32 = vld [vmem:[#allocation2 + $0x78] sm:$0xff]  ;;  %s343_s10 = scalar_lea.vmem %s204_s1, 128  ;;  %p348_p9 = scmp.lt.s32.totalorder %s204_s1, %s204_s1 }
  0x1b   :  { %289 = vmatpush3.bf16.msra.mxu0 %v288_v10  ;;  %v309_v30 = vpack.c.bf16 %v123_v29, %v122_v28  ;;  %v312_v33 = vpack.c.bf16 %v125_v32, %v124_v31  ;;  %p344_p8 = scmp.ne.s32.totalorder %s204_s1, %s343_s10  ;;  %p349_p10 = scmp.lt.s32.totalorder %s343_s10, %s343_s10 }
  0x1c   :  { %244 = vmatprep.subr.mxu0 %v374_v1  ;;  %295 = vmatpush3.bf16.msra.mxu1 %v294_v13 }
  0x1d   :  { %296 = vmatprep.subr.bf16.mxu1 %v372_v0  ;;  %p350_p11 = por %p349_p10, %p348_p9 }
  0x1f   :  { %245 = vmatpush3.msra.mxu0 %v34_v16  ;;  %p351_p12 = pnand %p350_p11, %p344_p8 }
  0x20   :  { %247 = vmatmul.mubr.msk.f32.vlgmr.msra.gmra.mrb[0].mxu0 %vm35_vm1, %v29_v17  ;;  %298 = vmatpush3.bf16.msra.mxu1 %v297_v18 }
  0x21   :  { %299 = vmatprep.subr.bf16.mxu1 %v372_v0 }
  0x24   :  { %301 = vmatpush3.bf16.msra.mxu1 %v300_v21 }
  0x25   :  { %302 = vmatprep.subr.bf16.mxu1 %v372_v0 }
  0x28   :  { %304 = vmatpush3.bf16.msra.mxu1 %v303_v24 }
  0x29   :  { %305 = vmatprep.subr.bf16.mxu1 %v372_v0 }
  0x2c   :  { %307 = vmatpush3.bf16.msra.mxu1 %v306_v27 }
  0x2d   :  { %308 = vmatprep.subr.bf16.mxu1 %v372_v0 }
  0x30   :  { %310 = vmatpush3.bf16.msra.mxu1 %v309_v30 }
  0x31   :  { %311 = vmatprep.subr.bf16.mxu1 %v372_v0 }
  0x34   :  { %313 = vmatpush3.bf16.msra.mxu1 %v312_v33 }
  0xf3   :  { %v105_v34 = vpop.f32.mrb[0].mxu0 }
  0xf4   :  { %v109_v35 = vmax.f32 %v105_v34, 0.0  ;;  %v248_v36 = vpop.f32.mrb[1].mxu0 }
  0xf6   :  { %282 = vmatmul.mubr.f32.vlgmr.msra.gmra.mrb[0].mxu1 %v109_v35 }
 0x1c9   :  { %v192_v37 = vpop.f32.mrb[0].mxu1 }
 0x1ca   :  { %196 = vst [vmem:[#allocation5] sm:$0xff] %v192_v37  ;;  %v283_v38 = vpop.f32.mrb[1].mxu1 }
 0x1cb   :  { %354 = shalt.err (!%p351_p12)
}
 0x1cc   :  { %s355_s13 = scalar_lea.hbm %s441_s3, 128 }
 0x1cd   :  { %p356_p13 = scmp.ne.s32.totalorder %s441_s3, %s355_s13  ;;  %p359_p0 = scmp.lt.u32.totalorder %s355_s13, %s441_s3 }
 0x1cf   :  { %p361_p1 = pnand %p359_p0, %p356_p13 }
 0x1d1   :  { %364 = shalt.err (!%p361_p1)
}
 0x1d2   :  { %206 = dma.vmem_to_hbm [thread:$0]  %s204_s1, 128, %s441_s3, [#allocation4]  }
 0x1d3   :  { %367 = dma.done.wait [#allocation4], 128  }
 0x1d4   :  { %368 = vsyncadd [#allocation4], 4294967168 }
 0x1d5   :  { %210 = vsyncpa [#allocation3], 1 }
 0x1d6   :  { %211 = vsyncpa [#allocation4], 1 }

</bundles_post_ra>
